<compile_context>
chip_gen: v7x
topology: tpu7x:2x2x1
jax: 0.10.0
libtpu: 0.0.40
codegen_flags: <defaults>
</compile_context>

<pallas_src>
import jax
import jax.numpy as jnp
from jax.experimental import pallas as pl
from jax.experimental.pallas import tpu as pltpu

LN_EPS = 1e-5  # PyTorch nn.LayerNorm default eps
_LANE = 128
_SUBLANE = 8
_MAX_TB = 128
_MAX_TP = 2048


def _round_up(x, m):
    return (x + m - 1) // m * m


def _cdiv(a, b):
    return (a + b - 1) // b


def predict_logit_kernel(x_ref, w_ref, b_ref, o_ref, xnm_ref):
    """One (TB batch rows) x (TP pheno lanes) tile.

    x_ref:   (TB, S, D)  batch block (caller dtype; stats in f32)
    w_ref:   (D, TP)     folded weight tile: gamma[:,None] * W   (lane padded)
    b_ref:   (1, TP)     folded bias tile:   beta @ W + b        (lane padded)
    o_ref:   (TB, TP)    mean-over-seq logits tile
    xnm_ref: (TB, D)     f32 scratch: seq-mean of normalized x, carried across
                         the pheno-tile axis so LN runs once per batch tile
    """
    j = pl.program_id(1)

    @pl.when(j == 0)
    def _():
        x = x_ref[...].astype(jnp.float32)                      # (TB, S, D)
        inv_d = 1.0 / x.shape[-1]
        s1 = jnp.sum(x, axis=-1, keepdims=True)                 # (TB, S, 1)
        s2 = jnp.sum(x * x, axis=-1, keepdims=True)             # (TB, S, 1)
        mean = s1 * inv_d
        var = jnp.maximum(s2 * inv_d - mean * mean, 0.0)        # biased, clamped
        xn = (x - mean) * jax.lax.rsqrt(var + LN_EPS)           # (TB, S, D)
        xnm_ref[...] = jnp.mean(xn, axis=1)                     # (TB, D)

    logits = jnp.dot(xnm_ref[...].astype(w_ref.dtype), w_ref[...],
                     preferred_element_type=jnp.float32)        # (TB, TP)
    o_ref[...] = (logits + b_ref[...]).astype(o_ref.dtype)


def predict_logit(x, ln_gamma, ln_beta, w, b, *, mxu_dtype=jnp.float32):
    """x: (B, S, D); ln_gamma/ln_beta: (D,); w: (D, P); b: (P,) -> (B, P) f32."""
    B, S, D = x.shape
    P = w.shape[1]

    x_itemsize = jnp.dtype(x.dtype).itemsize
    w_itemsize = jnp.dtype(mxu_dtype).itemsize

    # --- VMEM budget for the current chip generation --------------------------
    try:
        phys_vmem = int(pltpu.get_tpu_info().vmem_capacity_bytes)
    except Exception:
        phys_vmem = 64 * 1024 * 1024  # v7x per-TensorCore VMEM (most restrictive)
    budget = int(phys_vmem * 0.4)     # headroom for compiler-internal scratch

    # --- Pheno (lane) tiling: Pp multiple of 128, TP-sized tiles ---------------
    pp128 = _round_up(P, _LANE)
    tp_cap = max(_LANE,
                 (budget // 2 // max(2 * D * w_itemsize, 1)) // _LANE * _LANE)
    n_p = _cdiv(pp128, min(_MAX_TP, tp_cap))
    TP = _round_up(_cdiv(pp128, n_p), _LANE)
    Pp = n_p * TP

    # --- Batch tiling: TB from VMEM (x is double-buffered), minimal padding ----
    fixed = 2 * (D * TP * w_itemsize + TP * 4)                 # W + bias buffers
    per_row = 2 * S * D * x_itemsize + 2 * TP * 4 + D * 4      # x dbuf + out + scratch
    tb_cap = max(_SUBLANE,
                 min(_MAX_TB,
                     (max(budget - fixed, 0) // per_row) // _SUBLANE * _SUBLANE))
    n_b = _cdiv(B, tb_cap)
    if n_b < 2 and B > _SUBLANE:
        n_b = 2          # give v7x's second TensorCore a grid step when it's cheap
    TB = min(tb_cap, _round_up(_cdiv(B, n_b), _SUBLANE))
    n_b = _cdiv(B, TB)
    Bp = n_b * TB

    # --- Fold the LayerNorm affine into the linear layer (exact math) ----------
    g32 = ln_gamma.astype(jnp.float32)
    bt32 = ln_beta.astype(jnp.float32)
    w32 = w.astype(jnp.float32)
    w_eff = g32[:, None] * w32                      # (D, P)
    b_eff = bt32 @ w32 + b.astype(jnp.float32)      # (P,)

    # x is DMA'd in the caller's dtype (bf16 OK); LN stats stay f32 in-kernel.
    xp = x if Bp == B else jnp.pad(x, ((0, Bp - B), (0, 0), (0, 0)))
    wp = jnp.pad(w_eff, ((0, 0), (0, Pp - P))).astype(mxu_dtype)
    bp = jnp.pad(b_eff, (0, Pp - P)).reshape(1, Pp)

    # --- Explicit VMEM limit from actual block sizes ---------------------------
    need = (2 * TB * S * D * x_itemsize            # x double buffer
            + 2 * (D * TP * w_itemsize + TP * 4)   # W + bias (worst case 2 bufs)
            + 2 * TB * TP * 4                      # out double buffer
            + TB * D * 4)                          # xn_mean scratch
    vmem_limit = int(max(4 << 20, min(2 * need + (1 << 20), int(phys_vmem * 0.9))))

    cost = pl.CostEstimate(
        flops=int(2 * Bp * D * Pp + 9 * Bp * S * D),
        transcendentals=int(Bp * S),
        bytes_accessed=int(xp.size * x_itemsize + n_b * Pp * D * w_itemsize
                           + Pp * 4 + Bp * Pp * 4),
    )

    def run(single_buffer_params):
        # W / bias are grid-invariant only when the pheno dim is a single tile.
        const = ({'pipeline_mode': pl.Buffered(1)}
                 if (single_buffer_params and n_p == 1) else {})
        grid_spec = pltpu.PrefetchScalarGridSpec(
            num_scalar_prefetch=0,
            grid=(n_b, n_p),
            in_specs=[
                pl.BlockSpec((TB, S, D), lambda i, j: (i, 0, 0)),     # x tile
                pl.BlockSpec((D, TP), lambda i, j: (0, j), **const),  # folded W
                pl.BlockSpec((1, TP), lambda i, j: (0, j), **const),  # folded bias
            ],
            out_specs=pl.BlockSpec((TB, TP), lambda i, j: (i, j)),
            scratch_shapes=[pltpu.VMEM((TB, D), jnp.float32)],
        )
        return pl.pallas_call(
            predict_logit_kernel,
            out_shape=jax.ShapeDtypeStruct((Bp, Pp), jnp.float32),
            grid_spec=grid_spec,
            compiler_params=pltpu.CompilerParams(
                dimension_semantics=("parallel", "arbitrary"),
                vmem_limit_bytes=vmem_limit),
            cost_estimate=cost,
        )(xp, wp, bp)

    try:
        out = run(True)      # single-buffer grid-invariant params
    except Exception:        # pl.Buffered(1) unsupported on this jax/libtpu combo
        out = run(False)     # fall back to default double buffering

    return out[:B, :P]


def reference(x, ln_gamma, ln_beta, w, b):
    xf = x.astype(jnp.float32)
    mean = jnp.mean(xf, axis=-1, keepdims=True)
    var = jnp.mean((xf - mean) ** 2, axis=-1, keepdims=True)
    xn = (xf - mean) * jax.lax.rsqrt(var + LN_EPS)
    y = xn * ln_gamma + ln_beta
    logits = jnp.einsum("bsd,dp->bsp", y, w) + b
    return jnp.mean(logits, axis=1)


if __name__ == "__main__":
    # Small shapes consistent with the module:
    # batch=2, seq=8, instance_size_pheno=32, nb_phenos_possible=16
    B, S, D, P = 2, 8, 32, 16

    key = jax.random.PRNGKey(0)
    kx, kw, kb, kg, kbt = jax.random.split(key, 5)

    x = jax.random.normal(kx, (B, S, D), dtype=jnp.float32)

    # Deterministic synthetic parameters (nn.LayerNorm(D), nn.Linear(D, P)).
    ln_gamma = 1.0 + 0.01 * jax.random.normal(kg, (D,), dtype=jnp.float32)
    ln_beta = 0.01 * jax.random.normal(kbt, (D,), dtype=jnp.float32)
    w = jax.random.normal(kw, (D, P), dtype=jnp.float32) / jnp.sqrt(D)
    b = 0.1 * jax.random.normal(kb, (P,), dtype=jnp.float32)

    mxu_dtype = jnp.float32
    out = predict_logit(x, ln_gamma, ln_beta, w, b, mxu_dtype=mxu_dtype)
    out = jax.block_until_ready(out)

    ref = reference(x, ln_gamma, ln_beta, w, b)
    tol = 1e-4 if mxu_dtype == jnp.float32 else 2e-2  # bf16 MXU path is looser
    assert out.shape == (B, P), out.shape
    assert jnp.allclose(out, ref, atol=tol, rtol=tol), (
        float(jnp.max(jnp.abs(out - ref))))

    print("KERNEL_OK")
</pallas_src>

<mosaic_0001>
module attributes {stable_mosaic.version = 11 : i64} {
  func.func @predict_logit_kernel(%arg0: i32, %arg1: i32, %arg2: memref<8x8x32xf32, #tpu.memory_space<vmem>>, %arg3: memref<32x128xf32, #tpu.memory_space<vmem>>, %arg4: memref<1x128xf32, #tpu.memory_space<vmem>>, %arg5: memref<8x128xf32, #tpu.memory_space<vmem>>, %arg6: memref<8x32xf32, #tpu.memory_space<vmem>>) attributes {dimension_semantics = [#tpu.dimension_semantics<parallel>, #tpu.dimension_semantics<arbitrary>], iteration_bounds = array<i64: 1, 1>, scalar_prefetch = 0 : i64, scratch_operands = 1 : i64, tpu.core_type = #tpu.core_type<tc>, window_params = [{transform_indices = @transform_0, window_bounds = array<i64: 8, 8, 32>}, {pipeline_mode = #tpu.pipeline_mode<synchronous>, transform_indices = @transform_1, window_bounds = array<i64: 32, 128>}, {pipeline_mode = #tpu.pipeline_mode<synchronous>, transform_indices = @transform_2, window_bounds = array<i64: 1, 128>}, {transform_indices = @transform_3, window_bounds = array<i64: 8, 128>}]} {
    %c0_i32 = arith.constant 0 : i32
    %0 = arith.cmpi eq, %arg1, %c0_i32 : i32
    %1 = arith.extui %0 : i1 to i32
    %c0_i32_0 = arith.constant 0 : i32
    %2 = arith.cmpi ne, %1, %c0_i32_0 : i32
    scf.if %2 {
      %c0_8 = arith.constant 0 : index
      %c0_9 = arith.constant 0 : index
      %c0_10 = arith.constant 0 : index
      %10 = vector.load %arg2[%c0_8, %c0_9, %c0_10] : memref<8x8x32xf32, #tpu.memory_space<vmem>>, vector<8x8x32xf32>
      %cst_11 = arith.constant dense<0.000000e+00> : vector<8x8xf32>
      %11 = vector.multi_reduction <add>, %10, %cst_11 [2] : vector<8x8x32xf32> to vector<8x8xf32>
      %12 = vector.shape_cast %11 : vector<8x8xf32> to vector<8x8x1xf32>
      %13 = arith.mulf %10, %10 : vector<8x8x32xf32>
      %cst_12 = arith.constant dense<0.000000e+00> : vector<8x8xf32>
      %14 = vector.multi_reduction <add>, %13, %cst_12 [2] : vector<8x8x32xf32> to vector<8x8xf32>
      %15 = vector.shape_cast %14 : vector<8x8xf32> to vector<8x8x1xf32>
      %cst_13 = arith.constant 3.125000e-02 : f32
      %16 = vector.broadcast %cst_13 : f32 to vector<8x8x1xf32>
      %17 = arith.mulf %12, %16 : vector<8x8x1xf32>
      %cst_14 = arith.constant 3.125000e-02 : f32
      %18 = vector.broadcast %cst_14 : f32 to vector<8x8x1xf32>
      %19 = arith.mulf %15, %18 : vector<8x8x1xf32>
      %20 = arith.mulf %17, %17 : vector<8x8x1xf32>
      %21 = arith.subf %19, %20 : vector<8x8x1xf32>
      %cst_15 = arith.constant 0.000000e+00 : f32
      %22 = vector.broadcast %cst_15 : f32 to vector<8x8x1xf32>
      %23 = arith.maximumf %21, %22 : vector<8x8x1xf32>
      %24 = vector.broadcast %17 : vector<8x8x1xf32> to vector<8x8x32xf32>
      %25 = arith.subf %10, %24 : vector<8x8x32xf32>
      %cst_16 = arith.constant 9.99999974E-6 : f32
      %26 = vector.broadcast %cst_16 : f32 to vector<8x8x1xf32>
      %27 = arith.addf %23, %26 : vector<8x8x1xf32>
      %28 = math.rsqrt %27 : vector<8x8x1xf32>
      %29 = vector.broadcast %28 : vector<8x8x1xf32> to vector<8x8x32xf32>
      %30 = arith.mulf %25, %29 : vector<8x8x32xf32>
      %cst_17 = arith.constant dense<0.000000e+00> : vector<8x32xf32>
      %31 = vector.multi_reduction <add>, %30, %cst_17 [1] : vector<8x8x32xf32> to vector<8x32xf32>
      %cst_18 = arith.constant 8.000000e+00 : f32
      %32 = vector.broadcast %cst_18 : f32 to vector<8x32xf32>
      %33 = arith.divf %31, %32 : vector<8x32xf32>
      %c0_19 = arith.constant 0 : index
      %c0_20 = arith.constant 0 : index
      %34 = vector.load %arg6[%c0_19, %c0_20] : memref<8x32xf32, #tpu.memory_space<vmem>>, vector<8x32xf32>
      tpu.vector_store %arg6[%c0_19, %c0_20], %33 {strides = array<i32>} : memref<8x32xf32, #tpu.memory_space<vmem>>, vector<8x32xf32>,
    } else {
    }
    %c0 = arith.constant 0 : index
    %c0_1 = arith.constant 0 : index
    %3 = vector.load %arg6[%c0, %c0_1] : memref<8x32xf32, #tpu.memory_space<vmem>>, vector<8x32xf32>
    %c0_2 = arith.constant 0 : index
    %c0_3 = arith.constant 0 : index
    %4 = vector.load %arg3[%c0_2, %c0_3] : memref<32x128xf32, #tpu.memory_space<vmem>>, vector<32x128xf32>
    %cst = arith.constant dense<0.000000e+00> : vector<8x128xf32>
    %5 = tpu.matmul %3, %4, %cst {dimension_numbers = #tpu.dot_dimension_numbers<[1], [0], [0], [1], [0, 0, 1, 1], [], []>} : vector<8x32xf32>, vector<32x128xf32>, vector<8x128xf32> -> vector<8x128xf32>
    %c0_4 = arith.constant 0 : index
    %c0_5 = arith.constant 0 : index
    %6 = vector.load %arg4[%c0_4, %c0_5] : memref<1x128xf32, #tpu.memory_space<vmem>>, vector<1x128xf32>
    %7 = vector.broadcast %6 : vector<1x128xf32> to vector<8x128xf32>
    %8 = arith.addf %5, %7 : vector<8x128xf32>
    %c0_6 = arith.constant 0 : index
    %c0_7 = arith.constant 0 : index
    %9 = vector.load %arg5[%c0_6, %c0_7] : memref<8x128xf32, #tpu.memory_space<vmem>>, vector<8x128xf32>
    tpu.vector_store %arg5[%c0_6, %c0_7], %8 {strides = array<i32>} : memref<8x128xf32, #tpu.memory_space<vmem>>, vector<8x128xf32>,
    return
  }
  func.func @transform_0(%arg0: i32, %arg1: i32) -> (i32, i32, i32) {
    %c0_i32 = arith.constant 0 : i32
    %c0_i32_0 = arith.constant 0 : i32
    %c0_i32_1 = arith.constant 0 : i32
    return %arg0, %c0_i32, %c0_i32_0 : i32, i32, i32
  }
  func.func @transform_1(%arg0: i32, %arg1: i32) -> (i32, i32) {
    %c0_i32 = arith.constant 0 : i32
    %c0_i32_0 = arith.constant 0 : i32
    return %c0_i32, %arg1 : i32, i32
  }
  func.func @transform_2(%arg0: i32, %arg1: i32) -> (i32, i32) {
    %c0_i32 = arith.constant 0 : i32
    %c0_i32_0 = arith.constant 0 : i32
    return %c0_i32, %arg1 : i32, i32
  }
  func.func @transform_3(%arg0: i32, %arg1: i32) -> (i32, i32) {
    %c0_i32 = arith.constant 0 : i32
    return %arg0, %arg1 : i32, i32
  }
}

module attributes {stable_mosaic.version = 11 : i64} {
  func.func @predict_logit_kernel(%arg0: i32, %arg1: i32, %arg2: memref<8x8x32xf32, #tpu.memory_space<vmem>>, %arg3: memref<32x128xf32, #tpu.memory_space<vmem>>, %arg4: memref<1x128xf32, #tpu.memory_space<vmem>>, %arg5: memref<8x128xf32, #tpu.memory_space<vmem>>, %arg6: memref<8x32xf32, #tpu.memory_space<vmem>>) attributes {dimension_semantics = [#tpu.dimension_semantics<parallel>, #tpu.dimension_semantics<arbitrary>], iteration_bounds = array<i64: 1, 1>, scalar_prefetch = 0 : i64, scratch_operands = 1 : i64, tpu.core_type = #tpu.core_type<tc>, window_params = [{transform_indices = @transform_0, window_bounds = array<i64: 8, 8, 32>}, {transform_indices = @transform_1, window_bounds = array<i64: 32, 128>}, {transform_indices = @transform_2, window_bounds = array<i64: 1, 128>}, {transform_indices = @transform_3, window_bounds = array<i64: 8, 128>}]} {
    %c0_i32 = arith.constant 0 : i32
    %0 = arith.cmpi eq, %arg1, %c0_i32 : i32
    %1 = arith.extui %0 : i1 to i32
    %c0_i32_0 = arith.constant 0 : i32
    %2 = arith.cmpi ne, %1, %c0_i32_0 : i32
    scf.if %2 {
      %c0_8 = arith.constant 0 : index
      %c0_9 = arith.constant 0 : index
      %c0_10 = arith.constant 0 : index
      %10 = vector.load %arg2[%c0_8, %c0_9, %c0_10] : memref<8x8x32xf32, #tpu.memory_space<vmem>>, vector<8x8x32xf32>
      %cst_11 = arith.constant dense<0.000000e+00> : vector<8x8xf32>
      %11 = vector.multi_reduction <add>, %10, %cst_11 [2] : vector<8x8x32xf32> to vector<8x8xf32>
      %12 = vector.shape_cast %11 : vector<8x8xf32> to vector<8x8x1xf32>
      %13 = arith.mulf %10, %10 : vector<8x8x32xf32>
      %cst_12 = arith.constant dense<0.000000e+00> : vector<8x8xf32>
      %14 = vector.multi_reduction <add>, %13, %cst_12 [2] : vector<8x8x32xf32> to vector<8x8xf32>
      %15 = vector.shape_cast %14 : vector<8x8xf32> to vector<8x8x1xf32>
      %cst_13 = arith.constant 3.125000e-02 : f32
      %16 = vector.broadcast %cst_13 : f32 to vector<8x8x1xf32>
      %17 = arith.mulf %12, %16 : vector<8x8x1xf32>
      %cst_14 = arith.constant 3.125000e-02 : f32
      %18 = vector.broadcast %cst_14 : f32 to vector<8x8x1xf32>
      %19 = arith.mulf %15, %18 : vector<8x8x1xf32>
      %20 = arith.mulf %17, %17 : vector<8x8x1xf32>
      %21 = arith.subf %19, %20 : vector<8x8x1xf32>
      %cst_15 = arith.constant 0.000000e+00 : f32
      %22 = vector.broadcast %cst_15 : f32 to vector<8x8x1xf32>
      %23 = arith.maximumf %21, %22 : vector<8x8x1xf32>
      %24 = vector.broadcast %17 : vector<8x8x1xf32> to vector<8x8x32xf32>
      %25 = arith.subf %10, %24 : vector<8x8x32xf32>
      %cst_16 = arith.constant 9.99999974E-6 : f32
      %26 = vector.broadcast %cst_16 : f32 to vector<8x8x1xf32>
      %27 = arith.addf %23, %26 : vector<8x8x1xf32>
      %28 = math.rsqrt %27 : vector<8x8x1xf32>
      %29 = vector.broadcast %28 : vector<8x8x1xf32> to vector<8x8x32xf32>
      %30 = arith.mulf %25, %29 : vector<8x8x32xf32>
      %cst_17 = arith.constant dense<0.000000e+00> : vector<8x32xf32>
      %31 = vector.multi_reduction <add>, %30, %cst_17 [1] : vector<8x8x32xf32> to vector<8x32xf32>
      %cst_18 = arith.constant 8.000000e+00 : f32
      %32 = vector.broadcast %cst_18 : f32 to vector<8x32xf32>
      %33 = arith.divf %31, %32 : vector<8x32xf32>
      %c0_19 = arith.constant 0 : index
      %c0_20 = arith.constant 0 : index
      %34 = vector.load %arg6[%c0_19, %c0_20] : memref<8x32xf32, #tpu.memory_space<vmem>>, vector<8x32xf32>
      tpu.vector_store %arg6[%c0_19, %c0_20], %33 {strides = array<i32>} : memref<8x32xf32, #tpu.memory_space<vmem>>, vector<8x32xf32>,
    } else {
    }
    %c0 = arith.constant 0 : index
    %c0_1 = arith.constant 0 : index
    %3 = vector.load %arg6[%c0, %c0_1] : memref<8x32xf32, #tpu.memory_space<vmem>>, vector<8x32xf32>
    %c0_2 = arith.constant 0 : index
    %c0_3 = arith.constant 0 : index
    %4 = vector.load %arg3[%c0_2, %c0_3] : memref<32x128xf32, #tpu.memory_space<vmem>>, vector<32x128xf32>
    %cst = arith.constant dense<0.000000e+00> : vector<8x128xf32>
    %5 = tpu.matmul %3, %4, %cst {dimension_numbers = #tpu.dot_dimension_numbers<[1], [0], [0], [1], [0, 0, 1, 1], [], []>} : vector<8x32xf32>, vector<32x128xf32>, vector<8x128xf32> -> vector<8x128xf32>
    %c0_4 = arith.constant 0 : index
    %c0_5 = arith.constant 0 : index
    %6 = vector.load %arg4[%c0_4, %c0_5] : memref<1x128xf32, #tpu.memory_space<vmem>>, vector<1x128xf32>
    %7 = vector.broadcast %6 : vector<1x128xf32> to vector<8x128xf32>
    %8 = arith.addf %5, %7 : vector<8x128xf32>
    %c0_6 = arith.constant 0 : index
    %c0_7 = arith.constant 0 : index
    %9 = vector.load %arg5[%c0_6, %c0_7] : memref<8x128xf32, #tpu.memory_space<vmem>>, vector<8x128xf32>
    tpu.vector_store %arg5[%c0_6, %c0_7], %8 {strides = array<i32>} : memref<8x128xf32, #tpu.memory_space<vmem>>, vector<8x128xf32>,
    return
  }
  func.func @transform_0(%arg0: i32, %arg1: i32) -> (i32, i32, i32) {
    %c0_i32 = arith.constant 0 : i32
    %c0_i32_0 = arith.constant 0 : i32
    %c0_i32_1 = arith.constant 0 : i32
    return %arg0, %c0_i32, %c0_i32_0 : i32, i32, i32
  }
  func.func @transform_1(%arg0: i32, %arg1: i32) -> (i32, i32) {
    %c0_i32 = arith.constant 0 : i32
    %c0_i32_0 = arith.constant 0 : i32
    return %c0_i32, %arg1 : i32, i32
  }
  func.func @transform_2(%arg0: i32, %arg1: i32) -> (i32, i32) {
    %c0_i32 = arith.constant 0 : i32
    %c0_i32_0 = arith.constant 0 : i32
    return %c0_i32, %arg1 : i32, i32
  }
  func.func @transform_3(%arg0: i32, %arg1: i32) -> (i32, i32) {
    %c0_i32 = arith.constant 0 : i32
    return %arg0, %arg1 : i32, i32
  }
}

</mosaic_0001>

<bundles_post_ra>
// kernel: tpu_custom_call.1
= control target key start
LH: loop header
LB: loop body
LE: loop exit
PB: predicated region body
PF: predicated region fallthrough
CT: control target
= control target key end

     0   :  { %8 = vsyncpa [#allocation4], 0  ;;  %s667_s0 = inlined_call_operand.hbm [shape: f32[8,8,32], index: 0, kind: input, shape index: {}]   ;;  %s668_s1 = inlined_call_operand.hbm [shape: f32[32,128], index: 1, kind: input, shape index: {}]   ;;  %s669_s2 = inlined_call_operand.vmem [shape: f32[1,128], index: 2, kind: input, shape index: {}]   ;;  %s670_s3 = inlined_call_operand.hbm [shape: f32[8,128], index: 3, kind: output, shape index: {}]  }
   0x1   :  { %9 = vsyncpa [#allocation7], 0 }
   0x2   :  { %10 = vsyncpa [#allocation5], 0  ;;  %s496_s12 = smov [#allocation3]   ;;  %s424_s16 = scalar_lea.hbm %s667_s0, 1024 }
   0x3   :  { %s16_s13 = sshll.u32 %s496_s12, 4  ;;  %p425_p0 = scmp.ne.s32.totalorder %s667_s0, %s424_s16  ;;  %s17_s13 = int_to_ptr.vmem [resolvable:$true] %s16_s13 }
   0x4   :  { %p428_p1 = scmp.lt.u32.totalorder %s424_s16, %s667_s0 }
   0x6   :  { %p430_p2 = pnand %p428_p1, %p425_p0 }
   0x8   :  { %433 = shalt.err (!%p430_p2)
}
   0x9   :  { %s434_s21 = scalar_lea.vmem %s17_s13, 1024  ;;  %p439_p4 = scmp.lt.s32.totalorder %s17_s13, %s17_s13 }
   0xa   :  { %p435_p3 = scmp.ne.s32.totalorder %s17_s13, %s434_s21  ;;  %p440_p5 = scmp.lt.s32.totalorder %s434_s21, %s434_s21 }
   0xc   :  { %p441_p6 = por %p440_p5, %p439_p4 }
   0xe   :  { %p442_p7 = pnand %p441_p6, %p435_p3 }
  0x10   :  { %445 = shalt.err (!%p442_p7)
}
  0x11   :  { %s497_s22 = smov 128   ;;  %s498_s23 = smov 8  }
  0x12   :  { %22 = dma.hbm_to_vmem [thread:$0]  %s667_s0, 1024, %s17_s13, [#allocation4], %s497_s22, %s497_s22, %s498_s23  }
  0x13   :  { %s499_s26 = smov [#allocation6]   ;;  %s446_s30 = scalar_lea.hbm %s668_s1, 512 }
  0x14   :  { %s28_s27 = sshll.u32 %s499_s26, 4  ;;  %p447_p8 = scmp.ne.s32.totalorder %s668_s1, %s446_s30  ;;  %s29_s27 = int_to_ptr.vmem [resolvable:$true] %s28_s27 }
  0x15   :  { %p450_p9 = scmp.lt.u32.totalorder %s446_s30, %s668_s1 }
  0x17   :  { %p452_p10 = pnand %p450_p9, %p447_p8 }
  0x19   :  { %455 = shalt.err (!%p452_p10)
}
  0x1a   :  { %s456_s8 = scalar_lea.vmem %s29_s27, 512  ;;  %p461_p12 = scmp.lt.s32.totalorder %s29_s27, %s29_s27 }
  0x1b   :  { %p457_p11 = scmp.ne.s32.totalorder %s29_s27, %s456_s8  ;;  %p462_p13 = scmp.lt.s32.totalorder %s456_s8, %s456_s8 }
  0x1d   :  { %p463_p0 = por %p462_p13, %p461_p12 }
  0x1f   :  { %p464_p1 = pnand %p463_p0, %p457_p11 }
  0x21   :  { %467 = shalt.err (!%p464_p1)
}
  0x22   :  { %34 = dma.hbm_to_vmem [thread:$0]  %s668_s1, 512, %s29_s27, [#allocation7], %s497_s22, %s497_s22, %s498_s23  }
  0x23   :  { %490 = dma.done.wait [#allocation4], 1024  }
  0x24   :  { %491 = vsyncadd [#allocation4], 4294966272 }
  0x25   :  { %492 = dma.done.wait [#allocation7], 512  }
  0x26   :  { %493 = vsyncadd [#allocation7], 4294966784  ;;  %vm55_vm0 = vcmask 261120   ;;  %v548_v0 = vld [vmem:[#allocation3 + $0x10] sm:$0xff]  ;;  %v550_v1 = vld [vmem:[#allocation3] sm:$0xff]  ;;  %v500_v35 = vmov 0.0|0.0  }
  0x27   :  { %v552_v2 = vld [vmem:[#allocation3 + $0x18] sm:$0xff]  ;;  %v62_v3 = vsel %vm55_vm0, %v548_v0, 0.0  ;;  %v56_v4 = vsel %vm55_vm0, %v550_v1, 0.0  ;;  %v558_v5 = vld [vmem:[#allocation3 + $0x8] sm:$0xff]  ;;  %v80_v9 = vmul.f32 %v550_v1, %v550_v1  ;;  %v82_v12 = vmul.f32 %v548_v0, %v548_v0  ;;  %v572_v13 = vld [vmem:[#allocation3 + $0x20] sm:$0xff]  ;;  %394 = vmatprep.subr.bf16.mxu0 %v500_v35  ;;  %s503_s11 = smov [#allocation8]  }
  0x28   :  { %63 = vadd.xlane.f32.xlu1 %v62_v3  ;;  %57 = vadd.xlane.f32.xlu0 %v56_v4  ;;  %v65_v6 = vsel %vm55_vm0, %v552_v2, 0.0  ;;  %v59_v7 = vsel %vm55_vm0, %v558_v5, 0.0  ;;  %v81_v8 = vmul.f32 %v558_v5, %v558_v5  ;;  %v68_v15 = vsel %vm55_vm0, %v572_v13, 0.0  ;;  %v579_v17 = vld [vmem:[#allocation3 + $0x28] sm:$0xff]  ;;  %v586_v21 = vld [vmem:[#allocation3 + $0x30] sm:$0xff]  ;;  %v593_v25 = vld [vmem:[#allocation3 + $0x38] sm:$0xff] }
  0x29   :  { %v88_v11 = vsel %vm55_vm0, %v80_v9, 0.0  ;;  %v94_v14 = vsel %vm55_vm0, %v82_v12, 0.0  ;;  %v83_v16 = vmul.f32 %v552_v2, %v552_v2  ;;  %v71_v19 = vsel %vm55_vm0, %v579_v17, 0.0  ;;  %v274_v32 = vld [vmem:[#allocation6] sm:$0xff]  ;;  %v275_v33 = vld [vmem:[#allocation6 + $0x8] sm:$0xff]  ;;  %v276_v36 = vld [vmem:[#allocation6 + $0x10] sm:$0xff] }
  0x2a   :  { %v91_v10 = vsel %vm55_vm0, %v81_v8, 0.0  ;;  %v84_v20 = vmul.f32 %v572_v13, %v572_v13  ;;  %v74_v23 = vsel %vm55_vm0, %v586_v21, 0.0  ;;  %v85_v24 = vmul.f32 %v579_v17, %v579_v17  ;;  %v277_v37 = vld [vmem:[#allocation6 + $0x18] sm:$0xff]  ;;  %s366_s12 = sshll.u32 %s503_s11, 4  ;;  %s367_s12 = int_to_ptr.vmem [resolvable:$true] %s366_s12 }
  0x2b   :  { %v97_v18 = vsel %vm55_vm0, %v83_v16, 0.0  ;;  %v77_v27 = vsel %vm55_vm0, %v593_v25, 0.0  ;;  %v87_v28 = vmul.f32 %v593_v25, %v593_v25  ;;  %v86_v29 = vmul.f32 %v586_v21, %v586_v21  ;;  %s468_s13 = scalar_lea.vmem %s367_s12, 128  ;;  %p473_p3 = scmp.lt.s32.totalorder %s367_s12, %s367_s12 }
  0x2c   :  { %66 = vadd.xlane.f32.xlu1 %v65_v6  ;;  %60 = vadd.xlane.f32.xlu0 %v59_v7  ;;  %v100_v22 = vsel %vm55_vm0, %v84_v20, 0.0  ;;  %v103_v26 = vsel %vm55_vm0, %v85_v24, 0.0  ;;  %v395_v34 = vpack.c.bf16 %v275_v33, %v274_v32  ;;  %v398_v38 = vpack.c.bf16 %v277_v37, %v276_v36  ;;  %p469_p2 = scmp.ne.s32.totalorder %s367_s12, %s468_s13  ;;  %p474_p4 = scmp.lt.s32.totalorder %s468_s13, %s468_s13 }
  0x2d   :  { %v109_v30 = vsel %vm55_vm0, %v87_v28, 0.0  ;;  %v106_v31 = vsel %vm55_vm0, %v86_v29, 0.0  ;;  %vm501_vm1 = vmmov 0   ;;  %v502_v39 = vmov 0.0  }
  0x2e   :  { %396 = vmatpush3.bf16.msra.mxu0 %v395_v34  ;;  %391 = vmatprep.mubr.msk.f32.mxu0 %vm501_vm1, %v502_v39  ;;  %vm257_vm2 = vcmask 1041409   ;;  %vm259_vm3 = vcmask 1042434   ;;  %vm261_vm4 = vcmask 1043459   ;;  %vm263_vm5 = vcmask 1044484   ;;  %p475_p5 = por %p474_p4, %p473_p3 }
  0x2f   :  { %397 = vmatprep.subr.bf16.mxu0 %v500_v35  ;;  %vm265_vm6 = vcmask 1045509   ;;  %vm267_vm7 = vcmask 1046534   ;;  %vm269_vm8 = vcmask 1047559  }
  0x30   :  { %92 = vadd.xlane.f32.xlu1 %v91_v10  ;;  %89 = vadd.xlane.f32.xlu0 %v88_v11  ;;  %p476_p6 = pnand %p475_p5, %p469_p2 }
  0x32   :  { %399 = vmatpush3.bf16.msra.mxu0 %v398_v38 }
  0x34   :  { %95 = vadd.xlane.f32.xlu1 %v94_v14  ;;  %69 = vadd.xlane.f32.xlu0 %v68_v15 }
  0x38   :  { %98 = vadd.xlane.f32.xlu1 %v97_v18  ;;  %72 = vadd.xlane.f32.xlu0 %v71_v19 }
  0x3c   :  { %101 = vadd.xlane.f32.xlu1 %v100_v22  ;;  %75 = vadd.xlane.f32.xlu0 %v74_v23 }
  0x40   :  { %104 = vadd.xlane.f32.xlu1 %v103_v26  ;;  %78 = vadd.xlane.f32.xlu0 %v77_v27 }
  0x44   :  { %110 = vadd.xlane.f32.xlu1 %v109_v30  ;;  %107 = vadd.xlane.f32.xlu0 %v106_v31 }
  0xb5   :  { %v64_v40 = vpop.xlane.xlu1 %63  ;;  %v58_v41 = vpop.xlane.xlu0 %57 }
  0xb6   :  { %v112_v44 = vmul.f32 0.03125, %v58_v41  ;;  %v604_v46 = vmul.f32 0.03125, %v64_v40 }
  0xb8   :  { %v128_v49 = vmul.f32 %v112_v44, %v112_v44  ;;  %v130_v58 = vmul.f32 %v604_v46, %v604_v46  ;;  %v152_v34 = vsub.f32 %v550_v1, %v112_v44 }
  0xb9   :  { %v67_v42 = vpop.xlane.xlu1 %66  ;;  %v61_v43 = vpop.xlane.xlu0 %60 }
  0xba   :  { %v113_v45 = vmul.f32 0.03125, %v61_v43  ;;  %v606_v55 = vmul.f32 0.03125, %v67_v42 }
  0xbc   :  { %v129_v50 = vmul.f32 %v113_v45, %v113_v45  ;;  %v131_v4 = vmul.f32 %v606_v55, %v606_v55  ;;  %v153_v31 = vsub.f32 %v558_v5, %v113_v45  ;;  %v154_v5 = vsub.f32 %v548_v0, %v604_v46 }
  0xbd   :  { %v93_v47 = vpop.xlane.xlu1 %92  ;;  %v90_v48 = vpop.xlane.xlu0 %89 }
  0xbe   :  { %v121_v51 = vmul.f32 0.03125, %v93_v47  ;;  %v120_v52 = vmul.f32 0.03125, %v90_v48 }
  0xc0   :  { %v137_v53 = vsub.f32 %v121_v51, %v129_v50  ;;  %v136_v54 = vsub.f32 %v120_v52, %v128_v49 }
  0xc1   :  { %v96_v56 = vpop.xlane.xlu1 %95  ;;  %v70_v57 = vpop.xlane.xlu0 %69 }
  0xc2   :  { %v145_v59 = vmax.f32 %v137_v53, 0.0  ;;  %v144_v60 = vmax.f32 %v136_v54, 0.0  ;;  %v122_v61 = vmul.f32 0.03125, %v96_v56  ;;  %v612_v9 = vmul.f32 0.03125, %v70_v57 }
  0xc3   :  { %v155_v56 = vsub.f32 %v552_v2, %v606_v55 }
  0xc4   :  { %v161_v62 = vadd.f32 1e-05, %v145_v59  ;;  %v160_v63 = vadd.f32 1e-05, %v144_v60  ;;  %v138_v3 = vsub.f32 %v122_v61, %v130_v58  ;;  %v132_v18 = vmul.f32 %v612_v9, %v612_v9 }
  0xc5   :  { %v99_v6 = vpop.xlane.xlu1 %98  ;;  %v73_v7 = vpop.xlane.xlu0 %72 }
  0xc6   :  { %408 = vrsqrt.f32 %v161_v62  ;;  %v146_v8 = vmax.f32 %v138_v3, 0.0  ;;  %v123_v10 = vmul.f32 0.03125, %v99_v6  ;;  %v614_v14 = vmul.f32 0.03125, %v73_v7 }
  0xc7   :  { %410 = vrsqrt.f32 %v160_v63  ;;  %v156_v3 = vsub.f32 %v572_v13, %v612_v9 }
  0xc8   :  { %v162_v11 = vadd.f32 1e-05, %v146_v8  ;;  %v139_v12 = vsub.f32 %v123_v10, %v131_v4  ;;  %v133_v24 = vmul.f32 %v614_v14, %v614_v14 }
  0xc9   :  { %v102_v15 = vpop.xlane.xlu1 %101  ;;  %v76_v16 = vpop.xlane.xlu0 %75 }
  0xca   :  { %412 = vrsqrt.f32 %v162_v11  ;;  %v147_v19 = vmax.f32 %v139_v12, 0.0  ;;  %v124_v20 = vmul.f32 0.03125, %v102_v15  ;;  %v623_v32 = vmul.f32 0.03125, %v76_v16 }
  0xcb   :  { %v157_v12 = vsub.f32 %v579_v17, %v614_v14 }
  0xcc   :  { %v163_v22 = vadd.f32 1e-05, %v147_v19  ;;  %v140_v23 = vsub.f32 %v124_v20, %v132_v18  ;;  %v134_v45 = vmul.f32 %v623_v32, %v623_v32 }
  0xcd   :  { %v105_v26 = vpop.xlane.xlu1 %104  ;;  %v79_v27 = vpop.xlane.xlu0 %78 }
  0xce   :  { %414 = vrsqrt.f32 %v163_v22  ;;  %v148_v28 = vmax.f32 %v140_v23, 0.0  ;;  %v125_v29 = vmul.f32 0.03125, %v105_v26  ;;  %v620_v30 = vmul.f32 0.03125, %v79_v27 }
  0xd0   :  { %v409_v33 = vpop.eup %408  ;;  %v164_v35 = vadd.f32 1e-05, %v148_v28  ;;  %v141_v36 = vsub.f32 %v125_v29, %v133_v24  ;;  %v135_v39 = vmul.f32 %v620_v30, %v620_v30  ;;  %v159_v26 = vsub.f32 %v593_v25, %v620_v30 }
  0xd1   :  { %v411_v37 = vpop.eup %410  ;;  %v177_v38 = vmul.f32 %v409_v33, %v153_v31  ;;  %v111_v40 = vpop.xlane.xlu1 %110 }
  0xd2   :  { %v108_v41 = vpop.xlane.xlu0 %107  ;;  %v176_v42 = vmul.f32 %v411_v37, %v152_v34  ;;  %416 = vrsqrt.f32 %v164_v35  ;;  %v149_v43 = vmax.f32 %v141_v36, 0.0  ;;  %v127_v47 = vmul.f32 0.03125, %v111_v40 }
  0xd3   :  { %v126_v1 = vmul.f32 0.03125, %v108_v41  ;;  %v191_v50 = vsel %vm55_vm0, %v177_v38, 0.0  ;;  %v158_v34 = vsub.f32 %v586_v21, %v623_v32 }
  0xd4   :  { %v413_v44 = vpop.eup %412  ;;  %v165_v48 = vadd.f32 1e-05, %v149_v43  ;;  %v143_v49 = vsub.f32 %v127_v47, %v135_v39  ;;  %v184_v51 = vsel %vm55_vm0, %v176_v42, 0.0  ;;  %v192_v58 = vrot.slane %v191_v50, 4 }
  0xd5   :  { %v178_v52 = vmul.f32 %v413_v44, %v154_v5  ;;  %v142_v53 = vsub.f32 %v126_v1, %v134_v45  ;;  %v185_v59 = vrot.slane %v184_v51, 4 }
  0xd6   :  { %418 = vrsqrt.f32 %v165_v48  ;;  %v151_v54 = vmax.f32 %v143_v49, 0.0  ;;  %v193_v7 = vadd.f32 %v192_v58, %v191_v50 }
  0xd7   :  { %v198_v0 = vsel %vm55_vm0, %v178_v52, 0.0  ;;  %v150_v46 = vmax.f32 %v142_v53, 0.0  ;;  %v186_v2 = vadd.f32 %v185_v59, %v184_v51 }
  0xd8   :  { %v415_v57 = vpop.eup %414  ;;  %v167_v60 = vadd.f32 1e-05, %v151_v54  ;;  %v199_v61 = vrot.slane %v198_v0, 4  ;;  %v194_v18 = vrot.slane %v193_v7, 2 }
  0xd9   :  { %v179_v62 = vmul.f32 %v415_v57, %v155_v56  ;;  %v166_v63 = vadd.f32 1e-05, %v150_v46  ;;  %v187_v19 = vrot.slane %v186_v2, 2 }
  0xda   :  { %420 = vrsqrt.f32 %v167_v60  ;;  %v200_v8 = vadd.f32 %v199_v61, %v198_v0  ;;  %v195_v28 = vadd.f32 %v194_v18, %v193_v7 }
  0xdb   :  { %v205_v4 = vsel %vm55_vm0, %v179_v62, 0.0  ;;  %422 = vrsqrt.f32 %v166_v63  ;;  %v188_v29 = vadd.f32 %v187_v19, %v186_v2 }
  0xdc   :  { %v417_v6 = vpop.eup %416  ;;  %v206_v55 = vrot.slane %v205_v4, 4  ;;  %v201_v13 = vrot.slane %v200_v8, 2  ;;  %v196_v41 = vrot.slane %v195_v28, 1 }
  0xdd   :  { %v180_v10 = vmul.f32 %v417_v6, %v156_v3  ;;  %v189_v42 = vrot.slane %v188_v29, 1 }
  0xde   :  { %v207_v11 = vadd.f32 %v206_v55, %v205_v4  ;;  %v202_v33 = vadd.f32 %v201_v13, %v200_v8  ;;  %v197_v21 = vadd.f32 %v196_v41, %v195_v28 }
  0xdf   :  { %v212_v15 = vsel %vm55_vm0, %v180_v10, 0.0  ;;  %v190_v32 = vadd.f32 %v189_v42, %v188_v29 }
  0xe0   :  { %v419_v16 = vpop.eup %418  ;;  %v213_v20 = vrot.slane %v212_v15, 4  ;;  %v208_v22 = vrot.slane %v207_v11, 2  ;;  %v203_v43 = vrot.slane %v202_v33, 1  ;;  %v242_v46 = vmul.f32 0.125, %v197_v21 }
  0xe1   :  { %v181_v9 = vmul.f32 %v419_v16, %v157_v12  ;;  %v241_v57 = vmul.f32 0.125, %v190_v32 }
  0xe2   :  { %v214_v23 = vadd.f32 %v213_v20, %v212_v15  ;;  %v209_v36 = vadd.f32 %v208_v22, %v207_v11  ;;  %v204_v51 = vadd.f32 %v203_v43, %v202_v33  ;;  %v376_v20 = vld [vmem:[%s669_s2] ss:$0 sm:$0xff] }
  0xe3   :  { %v219_v24 = vsel %vm55_vm0, %v181_v9, 0.0  ;;  %v258_v6 = vsel %vm257_vm2, %v242_v46, %v241_v57 }
  0xe4   :  { %v421_v27 = vpop.eup %420  ;;  %v215_v31 = vrot.slane %v214_v23, 2  ;;  %v220_v17 = vrot.slane %v219_v24, 4  ;;  %v210_v5 = vrot.slane %v209_v36, 1  ;;  %v243_v60 = vmul.f32 0.125, %v204_v51 }
  0xe5   :  { %v423_v14 = vpop.eup %422  ;;  %v183_v35 = vmul.f32 %v421_v27, %v159_v26 }
  0xe6   :  { %v221_v37 = vadd.f32 %v220_v17, %v219_v24  ;;  %v216_v38 = vadd.f32 %v215_v31, %v214_v23  ;;  %v182_v40 = vmul.f32 %v423_v14, %v158_v34  ;;  %v211_v53 = vadd.f32 %v210_v5, %v209_v36 }
  0xe7   :  { %v233_v39 = vsel %vm55_vm0, %v183_v35, 0.0  ;;  %v260_v2 = vsel %vm259_vm3, %v243_v60, %v258_v6 }
  0xe8   :  { %v222_v25 = vrot.slane %v221_v37, 2  ;;  %v234_v30 = vrot.slane %v233_v39, 4  ;;  %v226_v47 = vsel %vm55_vm0, %v182_v40, 0.0  ;;  %v217_v44 = vrot.slane %v216_v38, 1 }
  0xe9   :  { %v227_v48 = vrot.slane %v226_v47, 4  ;;  %v244_v62 = vmul.f32 0.125, %v211_v53 }
  0xea   :  { %v223_v45 = vadd.f32 %v222_v25, %v221_v37  ;;  %v235_v1 = vadd.f32 %v234_v30, %v233_v39  ;;  %v218_v56 = vadd.f32 %v217_v44, %v216_v38 }
  0xeb   :  { %v228_v52 = vadd.f32 %v227_v48, %v226_v47  ;;  %v262_v8 = vsel %vm261_vm4, %v244_v62, %v260_v2 }
  0xec   :  { %v224_v49 = vrot.slane %v223_v45, 1  ;;  %v236_v50 = vrot.slane %v235_v1, 2  ;;  %v245_v3 = vmul.f32 0.125, %v218_v56 }
  0xed   :  { %v229_v0 = vrot.slane %v228_v52, 2 }
  0xee   :  { %v237_v54 = vadd.f32 %v236_v50, %v235_v1  ;;  %v225_v58 = vadd.f32 %v224_v49, %v223_v45  ;;  %v264_v11 = vsel %vm263_vm5, %v245_v3, %v262_v8 }
  0xef   :  { %v230_v61 = vadd.f32 %v229_v0, %v228_v52 }
  0xf0   :  { %v238_v59 = vrot.slane %v237_v54, 1  ;;  %v246_v7 = vmul.f32 0.125, %v225_v58 }
  0xf1   :  { %v231_v4 = vrot.slane %v230_v61, 1 }
  0xf2   :  { %v239_v63 = vadd.f32 %v238_v59, %v237_v54  ;;  %v266_v15 = vsel %vm265_vm6, %v246_v7, %v264_v11 }
  0xf3   :  { %v232_v55 = vadd.f32 %v231_v4, %v230_v61 }
  0xf4   :  { %v248_v10 = vmul.f32 0.125, %v239_v63 }
  0xf5   :  { %v247_v12 = vmul.f32 0.125, %v232_v55 }
  0xf7   :  { %v268_v16 = vsel %vm267_vm7, %v247_v12, %v266_v15 }
  0xf8   :  { %v270_v18 = vsel %vm269_vm8, %v248_v10, %v268_v16 }
  0xf9   :  { %272 = vst.msk [vmem:[#allocation2] sm:$0xff] %vm55_vm0, %v270_v18 }
 0x100   :  { %v273_v19 = vld [vmem:[#allocation2] sm:$0xff] }
 0x101   :  { %392 = vmatmul.mubr.msk.f32.vlgmr.msra.gmra.mrb[0].mxu0 %vm55_vm0, %v273_v19 }
 0x1d4   :  { %v355_v13 = vpop.f32.mrb[0].mxu0 }
 0x1d5   :  { %v356_v9 = vadd.f32 %v376_v20, %v355_v13  ;;  %v393_v22 = vpop.f32.mrb[1].mxu0 }
 0x1d7   :  { %359 = vst [vmem:[#allocation8] sm:$0xff] %v356_v9 }
 0x1d8   :  { %479 = shalt.err (!%p476_p6)
}
 0x1d9   :  { %s480_s16 = scalar_lea.hbm %s670_s3, 128 }
 0x1da   :  { %p481_p7 = scmp.ne.s32.totalorder %s670_s3, %s480_s16  ;;  %p484_p8 = scmp.lt.u32.totalorder %s480_s16, %s670_s3 }
 0x1dc   :  { %p486_p9 = pnand %p484_p8, %p481_p7 }
 0x1de   :  { %489 = shalt.err (!%p486_p9)
}
 0x1df   :  { %369 = dma.vmem_to_hbm [thread:$0]  %s367_s12, 128, %s670_s3, [#allocation5]  }
 0x1e0   :  { %494 = dma.done.wait [#allocation5], 128  }
 0x1e1   :  { %495 = vsyncadd [#allocation5], 4294967168 }
 0x1e2   :  { %373 = vsyncpa [#allocation4], 1 }
 0x1e3   :  { %374 = vsyncpa [#allocation7], 1 }
 0x1e4   :  { %375 = vsyncpa [#allocation5], 1 }

// kernel: tpu_custom_call.1
= control target key start
LH: loop header
LB: loop body
LE: loop exit
PB: predicated region body
PF: predicated region fallthrough
CT: control target
= control target key end

     0   :  { %8 = vsyncpa [#allocation4], 0  ;;  %s667_s0 = inlined_call_operand.hbm [shape: f32[8,8,32], index: 0, kind: input, shape index: {}]   ;;  %s668_s1 = inlined_call_operand.hbm [shape: f32[32,128], index: 1, kind: input, shape index: {}]   ;;  %s669_s2 = inlined_call_operand.vmem [shape: f32[1,128], index: 2, kind: input, shape index: {}]   ;;  %s670_s3 = inlined_call_operand.hbm [shape: f32[8,128], index: 3, kind: output, shape index: {}]  }
   0x1   :  { %9 = vsyncpa [#allocation7], 0 }
   0x2   :  { %10 = vsyncpa [#allocation5], 0  ;;  %s496_s12 = smov [#allocation3]   ;;  %s424_s16 = scalar_lea.hbm %s667_s0, 1024 }
   0x3   :  { %s16_s13 = sshll.u32 %s496_s12, 4  ;;  %p425_p0 = scmp.ne.s32.totalorder %s667_s0, %s424_s16  ;;  %s17_s13 = int_to_ptr.vmem [resolvable:$true] %s16_s13 }
   0x4   :  { %p428_p1 = scmp.lt.u32.totalorder %s424_s16, %s667_s0 }
   0x6   :  { %p430_p2 = pnand %p428_p1, %p425_p0 }
   0x8   :  { %433 = shalt.err (!%p430_p2)
}
   0x9   :  { %s434_s21 = scalar_lea.vmem %s17_s13, 1024  ;;  %p439_p4 = scmp.lt.s32.totalorder %s17_s13, %s17_s13 }
   0xa   :  { %p435_p3 = scmp.ne.s32.totalorder %s17_s13, %s434_s21  ;;  %p440_p5 = scmp.lt.s32.totalorder %s434_s21, %s434_s21 }
   0xc   :  { %p441_p6 = por %p440_p5, %p439_p4 }
   0xe   :  { %p442_p7 = pnand %p441_p6, %p435_p3 }
  0x10   :  { %445 = shalt.err (!%p442_p7)
}
  0x11   :  { %s497_s22 = smov 128   ;;  %s498_s23 = smov 8  }
  0x12   :  { %22 = dma.hbm_to_vmem [thread:$0]  %s667_s0, 1024, %s17_s13, [#allocation4], %s497_s22, %s497_s22, %s498_s23  }
  0x13   :  { %s499_s26 = smov [#allocation6]   ;;  %s446_s30 = scalar_lea.hbm %s668_s1, 512 }
  0x14   :  { %s28_s27 = sshll.u32 %s499_s26, 4  ;;  %p447_p8 = scmp.ne.s32.totalorder %s668_s1, %s446_s30  ;;  %s29_s27 = int_to_ptr.vmem [resolvable:$true] %s28_s27 }
  0x15   :  { %p450_p9 = scmp.lt.u32.totalorder %s446_s30, %s668_s1 }
  0x17   :  { %p452_p10 = pnand %p450_p9, %p447_p8 }
  0x19   :  { %455 = shalt.err (!%p452_p10)
}
  0x1a   :  { %s456_s8 = scalar_lea.vmem %s29_s27, 512  ;;  %p461_p12 = scmp.lt.s32.totalorder %s29_s27, %s29_s27 }
  0x1b   :  { %p457_p11 = scmp.ne.s32.totalorder %s29_s27, %s456_s8  ;;  %p462_p13 = scmp.lt.s32.totalorder %s456_s8, %s456_s8 }
  0x1d   :  { %p463_p0 = por %p462_p13, %p461_p12 }
  0x1f   :  { %p464_p1 = pnand %p463_p0, %p457_p11 }
  0x21   :  { %467 = shalt.err (!%p464_p1)
}
  0x22   :  { %34 = dma.hbm_to_vmem [thread:$0]  %s668_s1, 512, %s29_s27, [#allocation7], %s497_s22, %s497_s22, %s498_s23  }
  0x23   :  { %490 = dma.done.wait [#allocation4], 1024  }
  0x24   :  { %491 = vsyncadd [#allocation4], 4294966272 }
  0x25   :  { %492 = dma.done.wait [#allocation7], 512  }
  0x26   :  { %493 = vsyncadd [#allocation7], 4294966784  ;;  %vm55_vm0 = vcmask 261120   ;;  %v548_v0 = vld [vmem:[#allocation3 + $0x10] sm:$0xff]  ;;  %v550_v1 = vld [vmem:[#allocation3] sm:$0xff]  ;;  %v500_v35 = vmov 0.0|0.0  }
  0x27   :  { %v552_v2 = vld [vmem:[#allocation3 + $0x18] sm:$0xff]  ;;  %v62_v3 = vsel %vm55_vm0, %v548_v0, 0.0  ;;  %v56_v4 = vsel %vm55_vm0, %v550_v1, 0.0  ;;  %v558_v5 = vld [vmem:[#allocation3 + $0x8] sm:$0xff]  ;;  %v80_v9 = vmul.f32 %v550_v1, %v550_v1  ;;  %v82_v12 = vmul.f32 %v548_v0, %v548_v0  ;;  %v572_v13 = vld [vmem:[#allocation3 + $0x20] sm:$0xff]  ;;  %394 = vmatprep.subr.bf16.mxu0 %v500_v35  ;;  %s503_s11 = smov [#allocation8]  }
  0x28   :  { %63 = vadd.xlane.f32.xlu1 %v62_v3  ;;  %57 = vadd.xlane.f32.xlu0 %v56_v4  ;;  %v65_v6 = vsel %vm55_vm0, %v552_v2, 0.0  ;;  %v59_v7 = vsel %vm55_vm0, %v558_v5, 0.0  ;;  %v81_v8 = vmul.f32 %v558_v5, %v558_v5  ;;  %v68_v15 = vsel %vm55_vm0, %v572_v13, 0.0  ;;  %v579_v17 = vld [vmem:[#allocation3 + $0x28] sm:$0xff]  ;;  %v586_v21 = vld [vmem:[#allocation3 + $0x30] sm:$0xff]  ;;  %v593_v25 = vld [vmem:[#allocation3 + $0x38] sm:$0xff] }
  0x29   :  { %v88_v11 = vsel %vm55_vm0, %v80_v9, 0.0  ;;  %v94_v14 = vsel %vm55_vm0, %v82_v12, 0.0  ;;  %v83_v16 = vmul.f32 %v552_v2, %v552_v2  ;;  %v71_v19 = vsel %vm55_vm0, %v579_v17, 0.0  ;;  %v274_v32 = vld [vmem:[#allocation6] sm:$0xff]  ;;  %v275_v33 = vld [vmem:[#allocation6 + $0x8] sm:$0xff]  ;;  %v276_v36 = vld [vmem:[#allocation6 + $0x10] sm:$0xff] }
  0x2a   :  { %v91_v10 = vsel %vm55_vm0, %v81_v8, 0.0  ;;  %v84_v20 = vmul.f32 %v572_v13, %v572_v13  ;;  %v74_v23 = vsel %vm55_vm0, %v586_v21, 0.0  ;;  %v85_v24 = vmul.f32 %v579_v17, %v579_v17  ;;  %v277_v37 = vld [vmem:[#allocation6 + $0x18] sm:$0xff]  ;;  %s366_s12 = sshll.u32 %s503_s11, 4  ;;  %s367_s12 = int_to_ptr.vmem [resolvable:$true] %s366_s12 }
  0x2b   :  { %v97_v18 = vsel %vm55_vm0, %v83_v16, 0.0  ;;  %v77_v27 = vsel %vm55_vm0, %v593_v25, 0.0  ;;  %v87_v28 = vmul.f32 %v593_v25, %v593_v25  ;;  %v86_v29 = vmul.f32 %v586_v21, %v586_v21  ;;  %s468_s13 = scalar_lea.vmem %s367_s12, 128  ;;  %p473_p3 = scmp.lt.s32.totalorder %s367_s12, %s367_s12 }
  0x2c   :  { %66 = vadd.xlane.f32.xlu1 %v65_v6  ;;  %60 = vadd.xlane.f32.xlu0 %v59_v7  ;;  %v100_v22 = vsel %vm55_vm0, %v84_v20, 0.0  ;;  %v103_v26 = vsel %vm55_vm0, %v85_v24, 0.0  ;;  %v395_v34 = vpack.c.bf16 %v275_v33, %v274_v32  ;;  %v398_v38 = vpack.c.bf16 %v277_v37, %v276_v36  ;;  %p469_p2 = scmp.ne.s32.totalorder %s367_s12, %s468_s13  ;;  %p474_p4 = scmp.lt.s32.totalorder %s468_s13, %s468_s13 }
  0x2d   :  { %v109_v30 = vsel %vm55_vm0, %v87_v28, 0.0  ;;  %v106_v31 = vsel %vm55_vm0, %v86_v29, 0.0  ;;  %vm501_vm1 = vmmov 0   ;;  %v502_v39 = vmov 0.0  }
  0x2e   :  { %396 = vmatpush3.bf16.msra.mxu0 %v395_v34  ;;  %391 = vmatprep.mubr.msk.f32.mxu0 %vm501_vm1, %v502_v39  ;;  %vm257_vm2 = vcmask 1041409   ;;  %vm259_vm3 = vcmask 1042434   ;;  %vm261_vm4 = vcmask 1043459   ;;  %vm263_vm5 = vcmask 1044484   ;;  %p475_p5 = por %p474_p4, %p473_p3 }
  0x2f   :  { %397 = vmatprep.subr.bf16.mxu0 %v500_v35  ;;  %vm265_vm6 = vcmask 1045509   ;;  %vm267_vm7 = vcmask 1046534   ;;  %vm269_vm8 = vcmask 1047559  }
  0x30   :  { %92 = vadd.xlane.f32.xlu1 %v91_v10  ;;  %89 = vadd.xlane.f32.xlu0 %v88_v11  ;;  %p476_p6 = pnand %p475_p5, %p469_p2 }
  0x32   :  { %399 = vmatpush3.bf16.msra.mxu0 %v398_v38 }
  0x34   :  { %95 = vadd.xlane.f32.xlu1 %v94_v14  ;;  %69 = vadd.xlane.f32.xlu0 %v68_v15 }
  0x38   :  { %98 = vadd.xlane.f32.xlu1 %v97_v18  ;;  %72 = vadd.xlane.f32.xlu0 %v71_v19 }
  0x3c   :  { %101 = vadd.xlane.f32.xlu1 %v100_v22  ;;  %75 = vadd.xlane.f32.xlu0 %v74_v23 }
  0x40   :  { %104 = vadd.xlane.f32.xlu1 %v103_v26  ;;  %78 = vadd.xlane.f32.xlu0 %v77_v27 }
  0x44   :  { %110 = vadd.xlane.f32.xlu1 %v109_v30  ;;  %107 = vadd.xlane.f32.xlu0 %v106_v31 }
  0xb5   :  { %v64_v40 = vpop.xlane.xlu1 %63  ;;  %v58_v41 = vpop.xlane.xlu0 %57 }
  0xb6   :  { %v112_v44 = vmul.f32 0.03125, %v58_v41  ;;  %v604_v46 = vmul.f32 0.03125, %v64_v40 }
  0xb8   :  { %v128_v49 = vmul.f32 %v112_v44, %v112_v44  ;;  %v130_v58 = vmul.f32 %v604_v46, %v604_v46  ;;  %v152_v34 = vsub.f32 %v550_v1, %v112_v44 }
  0xb9   :  { %v67_v42 = vpop.xlane.xlu1 %66  ;;  %v61_v43 = vpop.xlane.xlu0 %60 }
  0xba   :  { %v113_v45 = vmul.f32 0.03125, %v61_v43  ;;  %v606_v55 = vmul.f32 0.03125, %v67_v42 }
  0xbc   :  { %v129_v50 = vmul.f32 %v113_v45, %v113_v45  ;;  %v131_v4 = vmul.f32 %v606_v55, %v606_v55  ;;  %v153_v31 = vsub.f32 %v558_v5, %v113_v45  ;;  %v154_v5 = vsub.f32 %v548_v0, %v604_v46 }
  0xbd   :  { %v93_v47 = vpop.xlane.xlu1 %92  ;;  %v90_v48 = vpop.xlane.xlu0 %89 }
  0xbe   :  { %v121_v51 = vmul.f32 0.03125, %v93_v47  ;;  %v120_v52 = vmul.f32 0.03125, %v90_v48 }
  0xc0   :  { %v137_v53 = vsub.f32 %v121_v51, %v129_v50  ;;  %v136_v54 = vsub.f32 %v120_v52, %v128_v49 }
  0xc1   :  { %v96_v56 = vpop.xlane.xlu1 %95  ;;  %v70_v57 = vpop.xlane.xlu0 %69 }
  0xc2   :  { %v145_v59 = vmax.f32 %v137_v53, 0.0  ;;  %v144_v60 = vmax.f32 %v136_v54, 0.0  ;;  %v122_v61 = vmul.f32 0.03125, %v96_v56  ;;  %v612_v9 = vmul.f32 0.03125, %v70_v57 }
  0xc3   :  { %v155_v56 = vsub.f32 %v552_v2, %v606_v55 }
  0xc4   :  { %v161_v62 = vadd.f32 1e-05, %v145_v59  ;;  %v160_v63 = vadd.f32 1e-05, %v144_v60  ;;  %v138_v3 = vsub.f32 %v122_v61, %v130_v58  ;;  %v132_v18 = vmul.f32 %v612_v9, %v612_v9 }
  0xc5   :  { %v99_v6 = vpop.xlane.xlu1 %98  ;;  %v73_v7 = vpop.xlane.xlu0 %72 }
  0xc6   :  { %408 = vrsqrt.f32 %v161_v62  ;;  %v146_v8 = vmax.f32 %v138_v3, 0.0  ;;  %v123_v10 = vmul.f32 0.03125, %v99_v6  ;;  %v614_v14 = vmul.f32 0.03125, %v73_v7 }
  0xc7   :  { %410 = vrsqrt.f32 %v160_v63  ;;  %v156_v3 = vsub.f32 %v572_v13, %v612_v9 }
  0xc8   :  { %v162_v11 = vadd.f32 1e-05, %v146_v8  ;;  %v139_v12 = vsub.f32 %v123_v10, %v131_v4  ;;  %v133_v24 = vmul.f32 %v614_v14, %v614_v14 }
  0xc9   :  { %v102_v15 = vpop.xlane.xlu1 %101  ;;  %v76_v16 = vpop.xlane.xlu0 %75 }
  0xca   :  { %412 = vrsqrt.f32 %v162_v11  ;;  %v147_v19 = vmax.f32 %v139_v12, 0.0  ;;  %v124_v20 = vmul.f32 0.03125, %v102_v15  ;;  %v623_v32 = vmul.f32 0.03125, %v76_v16 }
  0xcb   :  { %v157_v12 = vsub.f32 %v579_v17, %v614_v14 }
  0xcc   :  { %v163_v22 = vadd.f32 1e-05, %v147_v19  ;;  %v140_v23 = vsub.f32 %v124_v20, %v132_v18  ;;  %v134_v45 = vmul.f32 %v623_v32, %v623_v32 }
  0xcd   :  { %v105_v26 = vpop.xlane.xlu1 %104  ;;  %v79_v27 = vpop.xlane.xlu0 %78 }
  0xce   :  { %414 = vrsqrt.f32 %v163_v22  ;;  %v148_v28 = vmax.f32 %v140_v23, 0.0  ;;  %v125_v29 = vmul.f32 0.03125, %v105_v26  ;;  %v620_v30 = vmul.f32 0.03125, %v79_v27 }
  0xd0   :  { %v409_v33 = vpop.eup %408  ;;  %v164_v35 = vadd.f32 1e-05, %v148_v28  ;;  %v141_v36 = vsub.f32 %v125_v29, %v133_v24  ;;  %v135_v39 = vmul.f32 %v620_v30, %v620_v30  ;;  %v159_v26 = vsub.f32 %v593_v25, %v620_v30 }
  0xd1   :  { %v411_v37 = vpop.eup %410  ;;  %v177_v38 = vmul.f32 %v409_v33, %v153_v31  ;;  %v111_v40 = vpop.xlane.xlu1 %110 }
  0xd2   :  { %v108_v41 = vpop.xlane.xlu0 %107  ;;  %v176_v42 = vmul.f32 %v411_v37, %v152_v34  ;;  %416 = vrsqrt.f32 %v164_v35  ;;  %v149_v43 = vmax.f32 %v141_v36, 0.0  ;;  %v127_v47 = vmul.f32 0.03125, %v111_v40 }
  0xd3   :  { %v126_v1 = vmul.f32 0.03125, %v108_v41  ;;  %v191_v50 = vsel %vm55_vm0, %v177_v38, 0.0  ;;  %v158_v34 = vsub.f32 %v586_v21, %v623_v32 }
  0xd4   :  { %v413_v44 = vpop.eup %412  ;;  %v165_v48 = vadd.f32 1e-05, %v149_v43  ;;  %v143_v49 = vsub.f32 %v127_v47, %v135_v39  ;;  %v184_v51 = vsel %vm55_vm0, %v176_v42, 0.0  ;;  %v192_v58 = vrot.slane %v191_v50, 4 }
  0xd5   :  { %v178_v52 = vmul.f32 %v413_v44, %v154_v5  ;;  %v142_v53 = vsub.f32 %v126_v1, %v134_v45  ;;  %v185_v59 = vrot.slane %v184_v51, 4 }
  0xd6   :  { %418 = vrsqrt.f32 %v165_v48  ;;  %v151_v54 = vmax.f32 %v143_v49, 0.0  ;;  %v193_v7 = vadd.f32 %v192_v58, %v191_v50 }
  0xd7   :  { %v198_v0 = vsel %vm55_vm0, %v178_v52, 0.0  ;;  %v150_v46 = vmax.f32 %v142_v53, 0.0  ;;  %v186_v2 = vadd.f32 %v185_v59, %v184_v51 }
  0xd8   :  { %v415_v57 = vpop.eup %414  ;;  %v167_v60 = vadd.f32 1e-05, %v151_v54  ;;  %v199_v61 = vrot.slane %v198_v0, 4  ;;  %v194_v18 = vrot.slane %v193_v7, 2 }
  0xd9   :  { %v179_v62 = vmul.f32 %v415_v57, %v155_v56  ;;  %v166_v63 = vadd.f32 1e-05, %v150_v46  ;;  %v187_v19 = vrot.slane %v186_v2, 2 }
  0xda   :  { %420 = vrsqrt.f32 %v167_v60  ;;  %v200_v8 = vadd.f32 %v199_v61, %v198_v0  ;;  %v195_v28 = vadd.f32 %v194_v18, %v193_v7 }
  0xdb   :  { %v205_v4 = vsel %vm55_vm0, %v179_v62, 0.0  ;;  %422 = vrsqrt.f32 %v166_v63  ;;  %v188_v29 = vadd.f32 %v187_v19, %v186_v2 }
  0xdc   :  { %v417_v6 = vpop.eup %416  ;;  %v206_v55 = vrot.slane %v205_v4, 4  ;;  %v201_v13 = vrot.slane %v200_v8, 2  ;;  %v196_v41 = vrot.slane %v195_v28, 1 }
  0xdd   :  { %v180_v10 = vmul.f32 %v417_v6, %v156_v3  ;;  %v189_v42 = vrot.slane %v188_v29, 1 }
  0xde   :  { %v207_v11 = vadd.f32 %v206_v55, %v205_v4  ;;  %v202_v33 = vadd.f32 %v201_v13, %v200_v8  ;;  %v197_v21 = vadd.f32 %v196_v41, %v195_v28 }
  0xdf   :  { %v212_v15 = vsel %vm55_vm0, %v180_v10, 0.0  ;;  %v190_v32 = vadd.f32 %v189_v42, %v188_v29 }
  0xe0   :  { %v419_v16 = vpop.eup %418  ;;  %v213_v20 = vrot.slane %v212_v15, 4  ;;  %v208_v22 = vrot.slane %v207_v11, 2  ;;  %v203_v43 = vrot.slane %v202_v33, 1  ;;  %v242_v46 = vmul.f32 0.125, %v197_v21 }
  0xe1   :  { %v181_v9 = vmul.f32 %v419_v16, %v157_v12  ;;  %v241_v57 = vmul.f32 0.125, %v190_v32 }
  0xe2   :  { %v214_v23 = vadd.f32 %v213_v20, %v212_v15  ;;  %v209_v36 = vadd.f32 %v208_v22, %v207_v11  ;;  %v204_v51 = vadd.f32 %v203_v43, %v202_v33  ;;  %v376_v20 = vld [vmem:[%s669_s2] ss:$0 sm:$0xff] }
  0xe3   :  { %v219_v24 = vsel %vm55_vm0, %v181_v9, 0.0  ;;  %v258_v6 = vsel %vm257_vm2, %v242_v46, %v241_v57 }
  0xe4   :  { %v421_v27 = vpop.eup %420  ;;  %v215_v31 = vrot.slane %v214_v23, 2  ;;  %v220_v17 = vrot.slane %v219_v24, 4  ;;  %v210_v5 = vrot.slane %v209_v36, 1  ;;  %v243_v60 = vmul.f32 0.125, %v204_v51 }
  0xe5   :  { %v423_v14 = vpop.eup %422  ;;  %v183_v35 = vmul.f32 %v421_v27, %v159_v26 }
  0xe6   :  { %v221_v37 = vadd.f32 %v220_v17, %v219_v24  ;;  %v216_v38 = vadd.f32 %v215_v31, %v214_v23  ;;  %v182_v40 = vmul.f32 %v423_v14, %v158_v34  ;;  %v211_v53 = vadd.f32 %v210_v5, %v209_v36 }
  0xe7   :  { %v233_v39 = vsel %vm55_vm0, %v183_v35, 0.0  ;;  %v260_v2 = vsel %vm259_vm3, %v243_v60, %v258_v6 }
  0xe8   :  { %v222_v25 = vrot.slane %v221_v37, 2  ;;  %v234_v30 = vrot.slane %v233_v39, 4  ;;  %v226_v47 = vsel %vm55_vm0, %v182_v40, 0.0  ;;  %v217_v44 = vrot.slane %v216_v38, 1 }
  0xe9   :  { %v227_v48 = vrot.slane %v226_v47, 4  ;;  %v244_v62 = vmul.f32 0.125, %v211_v53 }
  0xea   :  { %v223_v45 = vadd.f32 %v222_v25, %v221_v37  ;;  %v235_v1 = vadd.f32 %v234_v30, %v233_v39  ;;  %v218_v56 = vadd.f32 %v217_v44, %v216_v38 }
  0xeb   :  { %v228_v52 = vadd.f32 %v227_v48, %v226_v47  ;;  %v262_v8 = vsel %vm261_vm4, %v244_v62, %v260_v2 }
  0xec   :  { %v224_v49 = vrot.slane %v223_v45, 1  ;;  %v236_v50 = vrot.slane %v235_v1, 2  ;;  %v245_v3 = vmul.f32 0.125, %v218_v56 }
  0xed   :  { %v229_v0 = vrot.slane %v228_v52, 2 }
  0xee   :  { %v237_v54 = vadd.f32 %v236_v50, %v235_v1  ;;  %v225_v58 = vadd.f32 %v224_v49, %v223_v45  ;;  %v264_v11 = vsel %vm263_vm5, %v245_v3, %v262_v8 }
  0xef   :  { %v230_v61 = vadd.f32 %v229_v0, %v228_v52 }
  0xf0   :  { %v238_v59 = vrot.slane %v237_v54, 1  ;;  %v246_v7 = vmul.f32 0.125, %v225_v58 }
  0xf1   :  { %v231_v4 = vrot.slane %v230_v61, 1 }
  0xf2   :  { %v239_v63 = vadd.f32 %v238_v59, %v237_v54  ;;  %v266_v15 = vsel %vm265_vm6, %v246_v7, %v264_v11 }
  0xf3   :  { %v232_v55 = vadd.f32 %v231_v4, %v230_v61 }
  0xf4   :  { %v248_v10 = vmul.f32 0.125, %v239_v63 }
  0xf5   :  { %v247_v12 = vmul.f32 0.125, %v232_v55 }
  0xf7   :  { %v268_v16 = vsel %vm267_vm7, %v247_v12, %v266_v15 }
  0xf8   :  { %v270_v18 = vsel %vm269_vm8, %v248_v10, %v268_v16 }
  0xf9   :  { %272 = vst.msk [vmem:[#allocation2] sm:$0xff] %vm55_vm0, %v270_v18 }
 0x100   :  { %v273_v19 = vld [vmem:[#allocation2] sm:$0xff] }
 0x101   :  { %392 = vmatmul.mubr.msk.f32.vlgmr.msra.gmra.mrb[0].mxu0 %vm55_vm0, %v273_v19 }
 0x1d4   :  { %v355_v13 = vpop.f32.mrb[0].mxu0 }
 0x1d5   :  { %v356_v9 = vadd.f32 %v376_v20, %v355_v13  ;;  %v393_v22 = vpop.f32.mrb[1].mxu0 }
 0x1d7   :  { %359 = vst [vmem:[#allocation8] sm:$0xff] %v356_v9 }
 0x1d8   :  { %479 = shalt.err (!%p476_p6)
}
 0x1d9   :  { %s480_s16 = scalar_lea.hbm %s670_s3, 128 }
 0x1da   :  { %p481_p7 = scmp.ne.s32.totalorder %s670_s3, %s480_s16  ;;  %p484_p8 = scmp.lt.u32.totalorder %s480_s16, %s670_s3 }
 0x1dc   :  { %p486_p9 = pnand %p484_p8, %p481_p7 }
 0x1de   :  { %489 = shalt.err (!%p486_p9)
}
 0x1df   :  { %369 = dma.vmem_to_hbm [thread:$0]  %s367_s12, 128, %s670_s3, [#allocation5]  }
 0x1e0   :  { %494 = dma.done.wait [#allocation5], 128  }
 0x1e1   :  { %495 = vsyncadd [#allocation5], 4294967168 }
 0x1e2   :  { %373 = vsyncpa [#allocation4], 1 }
 0x1e3   :  { %374 = vsyncpa [#allocation7], 1 }
 0x1e4   :  { %375 = vsyncpa [#allocation5], 1 }

</bundles_post_ra>
